<compile_context>
chip_gen: v7x
topology: tpu7x:2x2x1
jax: 0.10.0
libtpu: 0.0.40
codegen_flags: <defaults>
</compile_context>

<pallas_src>
import math

import jax
import jax.numpy as jnp
from jax.experimental import pallas as pl
from jax.experimental.pallas import tpu as pltpu


# --------------------------------------------------------------------------
# Primary path: direct HBM -> HBM DMA (no VMEM staging at all).
# --------------------------------------------------------------------------

def _split_range(total: int, parts: int):
    """Split [0, total) into `parts` near-equal static (offset, length) chunks."""
    parts = max(1, min(parts, total))
    base, rem = divmod(total, parts)
    out, off = [], 0
    for i in range(parts):
        ln = base + (1 if i < rem else 0)
        out.append((off, ln))
        off += ln
    return out


def _make_dma_kernel(copy_plan):
    """copy_plan: list of (batch_slice, src_channel_slice, dst_channel_slice).

    All slices are static Python slices; the loop fully unrolls at trace time.
    All DMAs are started first (kept in flight together), then waited on.
    """
    n_dmas = len(copy_plan)

    def kernel(x_hbm, y_hbm, sems):
        copies = []
        for k, (bsl, src_csl, dst_csl) in enumerate(copy_plan):
            cp = pltpu.make_async_copy(
                x_hbm.at[bsl, src_csl, :, :],
                y_hbm.at[bsl, dst_csl, :, :],
                sems.at[k],
            )
            cp.start()
            copies.append(cp)
        for cp in copies:
            cp.wait()

    return kernel, n_dmas


def _extract_dma(x: jax.Array, s: int, c_out: int) -> jax.Array:
    N, C, H, W = x.shape
    hw = H * W
    itemsize = jnp.dtype(x.dtype).itemsize
    total_bytes = N * c_out * hw * itemsize

    # 1..8 DMAs in flight; keep each DMA >= ~256 KiB when the tensor allows it.
    MIN_DMA_BYTES = 256 << 10
    MAX_DMAS = 8
    n_target = int(max(1, min(MAX_DMAS, total_bytes // MIN_DMA_BYTES)))
    nb = max(1, min(N, n_target))              # chunks along batch
    nc = max(1, min(c_out, n_target // nb))    # chunks along channels

    copy_plan = []
    for (b0, bl) in _split_range(N, nb):
        for (c0, cl) in _split_range(c_out, nc):
            copy_plan.append((slice(b0, b0 + bl),
                              slice(s + c0, s + c0 + cl),
                              slice(c0, c0 + cl)))

    kernel, n_dmas = _make_dma_kernel(copy_plan)

    cost = pl.CostEstimate(flops=0, transcendentals=0,
                           bytes_accessed=2 * total_bytes)

    return pl.pallas_call(
        kernel,
        out_shape=jax.ShapeDtypeStruct((N, c_out, H, W), x.dtype),
        in_specs=[pl.BlockSpec(memory_space=pl.ANY)],
        out_specs=pl.BlockSpec(memory_space=pl.ANY),
        scratch_shapes=[pltpu.SemaphoreType.DMA((n_dmas,))],
        cost_estimate=cost,
    )(x)


# --------------------------------------------------------------------------
# Safety-net path: blocked VMEM-staged copy (only used if the direct
# HBM->HBM DMA path fails to lower on the current backend).
# --------------------------------------------------------------------------

def _copy_kernel(x_ref, o_ref):
    o_ref[...] = x_ref[...]


def _sublane_tile(dtype) -> int:
    # 8 for f32, 16 for bf16, 32 for int8/fp8.
    return max(8, 32 // jnp.dtype(dtype).itemsize)


def _round_up(v: int, m: int) -> int:
    return -(-v // m) * m


def _extract_staged(x: jax.Array, s: int, c_out: int) -> jax.Array:
    N, C, H, W = x.shape
    hw = H * W
    itemsize = jnp.dtype(x.dtype).itemsize
    st = _sublane_tile(x.dtype)
    TARGET = 4 << 20  # padded per-block VMEM bytes

    cost = pl.CostEstimate(flops=0, transcendentals=0,
                           bytes_accessed=2 * N * c_out * hw * itemsize)
    base = c_out if s == 0 else math.gcd(s, c_out)

    # Preferred: lane-dense 3-D view (N, C, H*W), sublane-dense channel blocks.
    def padded3(g):  # padded VMEM bytes of a (1, g, hw) block
        return _round_up(g, st) * _round_up(hw, 128) * itemsize

    legal = [g for g in range(1, base + 1)
             if base % g == 0 and g % st == 0 and padded3(g) <= TARGET]
    if legal:
        g = max(legal)
        off = s // g                       # exact: g | s (or s == 0)
        x3 = x.reshape(N, C, hw)
        vmem_limit = min(64 << 20, max(32 << 20, 4 * padded3(g) + (4 << 20)))
        y3 = pl.pallas_call(
            _copy_kernel,
            out_shape=jax.ShapeDtypeStruct((N, c_out, hw), x.dtype),
            grid=(N, c_out // g),
            in_specs=[pl.BlockSpec((1, g, hw), lambda n, c: (n, c + off, 0))],
            out_specs=pl.BlockSpec((1, g, hw), lambda n, c: (n, c, 0)),
            compiler_params=pltpu.CompilerParams(
                dimension_semantics=("parallel", "parallel"),
                vmem_limit_bytes=vmem_limit),
            cost_estimate=cost,
        )(x3)
        return y3.reshape(N, c_out, H, W)

    # Last resort: full (H, W) trailing blocks — always layout-legal.
    def padded4(cb):  # padded VMEM bytes of a (1, cb, H, W) block
        return cb * _round_up(H, st) * _round_up(W, 128) * itemsize

    c_blk = max([d for d in range(1, base + 1)
                 if base % d == 0 and padded4(d) <= TARGET] or [1])
    s_blk = s // c_blk                      # exact: c_blk | s (or s == 0)
    vmem_limit = min(64 << 20, max(32 << 20, 4 * padded4(c_blk) + (4 << 20)))
    return pl.pallas_call(
        _copy_kernel,
        out_shape=jax.ShapeDtypeStruct((N, c_out, H, W), x.dtype),
        grid=(N, c_out // c_blk),
        in_specs=[pl.BlockSpec((1, c_blk, H, W),
                               lambda n, c: (n, c + s_blk, 0, 0))],
        out_specs=pl.BlockSpec((1, c_blk, H, W), lambda n, c: (n, c, 0, 0)),
        compiler_params=pltpu.CompilerParams(
            dimension_semantics=("parallel", "parallel"),
            vmem_limit_bytes=vmem_limit),
        cost_estimate=cost,
    )(x)


# --------------------------------------------------------------------------
# Public wrapper (forward semantics of the PyTorch module).
# --------------------------------------------------------------------------

_DMA_PATH_OK = True


def extract_features(x: jax.Array, start: int, end: int) -> jax.Array:
    """Equivalent of ExtractFeatures(start, end).forward(x) for NCHW input."""
    if x.ndim != 4:
        raise ValueError(
            f"`input`'s number of dimensions must be 4, but got {x.ndim}."
        )
    N, C, H, W = x.shape
    # Python-slice semantics (handles negatives / clipping), same as PyTorch.
    s, e, _ = slice(start, end).indices(C)
    c_out = max(e - s, 0)
    if c_out == 0:
        return jnp.zeros((N, 0, H, W), dtype=x.dtype)

    global _DMA_PATH_OK
    if _DMA_PATH_OK:
        try:
            return _extract_dma(x, s, c_out)
        except Exception:
            # Direct HBM->HBM DMA not supported on this backend: use the
            # (still Pallas) VMEM-staged block copy instead.
            _DMA_PATH_OK = False
    return _extract_staged(x, s, c_out)


class ExtractFeatures:
    """JAX/Pallas equivalent of the PyTorch ExtractFeatures module."""

    def __init__(self, start: int, end: int):
        self.start = start
        self.end = end

    def __call__(self, x: jax.Array) -> jax.Array:
        return extract_features(x, self.start, self.end)


if __name__ == "__main__":
    key = jax.random.PRNGKey(0)

    # Primary shape from the module spec.
    N, C, H, W = 2, 4, 16, 16
    x = jax.random.normal(key, (N, C, H, W), dtype=jnp.float32)

    # Several offsets, including negative indices (Python slice semantics).
    for start, end in [(1, 3), (0, 4), (2, 4), (-3, -1)]:
        y = jax.block_until_ready(extract_features(x, start, end))
        ref = x[:, slice(start, end), :, :]
        assert y.shape == ref.shape, (start, end, y.shape, ref.shape)
        assert jnp.array_equal(y, ref), f"mismatch for slice {start}:{end}"

    # Awkward spatial dims (H*W not 128-aligned) and odd channel offset:
    # element-granular DMA offsets make this a non-issue.
    x2 = jax.random.normal(jax.random.PRNGKey(1), (2, 16, 12, 12),
                           dtype=jnp.float32)
    y2 = jax.block_until_ready(extract_features(x2, 3, 11))
    assert jnp.array_equal(y2, x2[:, 3:11, :, :]), "mismatch on 12x12 case"

    # Slightly larger case so the plan issues multiple concurrent DMAs.
    x3 = jax.random.normal(jax.random.PRNGKey(2), (2, 32, 64, 64),
                           dtype=jnp.float32)
    y3 = jax.block_until_ready(extract_features(x3, 4, 28))
    assert jnp.array_equal(y3, x3[:, 4:28, :, :]), "mismatch on multi-DMA case"

    # Module-style usage.
    m = ExtractFeatures(1, 3)
    y = jax.block_until_ready(m(x))
    assert jnp.array_equal(y, x[:, 1:3, :, :])

    print("KERNEL_OK")
</pallas_src>

<mosaic_0001>
module attributes {stable_mosaic.version = 11 : i64} {
  func.func @kernel(%arg0: memref<2x4x16x16xf32, #tpu.memory_space<any>>, %arg1: memref<2x2x16x16xf32, #tpu.memory_space<any>>, %arg2: memref<1x!tpu.dma_semaphore, #tpu.memory_space<semaphore_mem>>) attributes {dimension_semantics = [], scalar_prefetch = 0 : i64, scratch_operands = 1 : i64, tpu.core_type = #tpu.core_type<tc>} {
    %c0_i32 = arith.constant 0 : i32
    %c0_i32_0 = arith.constant 0 : i32
    %c1_i32 = arith.constant 1 : i32
    %c0_i32_1 = arith.constant 0 : i32
    %c0_i32_2 = arith.constant 0 : i32
    %0 = tpu.memref_slice %arg0[%c0_i32_0, %c1_i32, %c0_i32_1, %c0_i32_2] : memref<2x4x16x16xf32, #tpu.memory_space<any>> -> memref<2x2x16x16xf32, #tpu.memory_space<any>>
    %c0_i32_3 = arith.constant 0 : i32
    %c0_i32_4 = arith.constant 0 : i32
    %c0_i32_5 = arith.constant 0 : i32
    %c0_i32_6 = arith.constant 0 : i32
    %1 = tpu.memref_slice %arg1[%c0_i32_3, %c0_i32_4, %c0_i32_5, %c0_i32_6] : memref<2x2x16x16xf32, #tpu.memory_space<any>> -> memref<2x2x16x16xf32, #tpu.memory_space<any>>
    %2 = tpu.memref_slice %arg2[%c0_i32] : memref<1x!tpu.dma_semaphore, #tpu.memory_space<semaphore_mem>> -> memref<1x!tpu.dma_semaphore, #tpu.memory_space<semaphore_mem>>
    %3 = tpu.memref_squeeze %2 : memref<1x!tpu.dma_semaphore, #tpu.memory_space<semaphore_mem>> -> memref<!tpu.dma_semaphore, #tpu.memory_space<semaphore_mem>>
    tpu.enqueue_dma source(%0 : memref<2x2x16x16xf32, #tpu.memory_space<any>>) target(%1 : memref<2x2x16x16xf32, #tpu.memory_space<any>>) target_semaphore(%3 : memref<!tpu.dma_semaphore, #tpu.memory_space<semaphore_mem>>)
    %c0_i32_7 = arith.constant 0 : i32
    %c0_i32_8 = arith.constant 0 : i32
    %c1_i32_9 = arith.constant 1 : i32
    %c0_i32_10 = arith.constant 0 : i32
    %c0_i32_11 = arith.constant 0 : i32
    %4 = tpu.memref_slice %arg0[%c0_i32_8, %c1_i32_9, %c0_i32_10, %c0_i32_11] : memref<2x4x16x16xf32, #tpu.memory_space<any>> -> memref<2x2x16x16xf32, #tpu.memory_space<any>>
    %c0_i32_12 = arith.constant 0 : i32
    %c0_i32_13 = arith.constant 0 : i32
    %c0_i32_14 = arith.constant 0 : i32
    %c0_i32_15 = arith.constant 0 : i32
    %5 = tpu.memref_slice %arg1[%c0_i32_12, %c0_i32_13, %c0_i32_14, %c0_i32_15] : memref<2x2x16x16xf32, #tpu.memory_space<any>> -> memref<2x2x16x16xf32, #tpu.memory_space<any>>
    %6 = tpu.memref_slice %arg2[%c0_i32_7] : memref<1x!tpu.dma_semaphore, #tpu.memory_space<semaphore_mem>> -> memref<1x!tpu.dma_semaphore, #tpu.memory_space<semaphore_mem>>
    %7 = tpu.memref_squeeze %6 : memref<1x!tpu.dma_semaphore, #tpu.memory_space<semaphore_mem>> -> memref<!tpu.dma_semaphore, #tpu.memory_space<semaphore_mem>>
    tpu.wait_dma2 semaphore(%7 : memref<!tpu.dma_semaphore, #tpu.memory_space<semaphore_mem>>) src(%4 : memref<2x2x16x16xf32, #tpu.memory_space<any>>) dst(%5 : memref<2x2x16x16xf32, #tpu.memory_space<any>>)
    return
  }
}

module attributes {stable_mosaic.version = 11 : i64} {
  func.func @_copy_kernel(%arg0: i32, %arg1: i32, %arg2: memref<1x1x16x16xf32, #tpu.memory_space<vmem>>, %arg3: memref<1x1x16x16xf32, #tpu.memory_space<vmem>>) attributes {dimension_semantics = [#tpu.dimension_semantics<parallel>, #tpu.dimension_semantics<parallel>], iteration_bounds = array<i64: 2, 2>, scalar_prefetch = 0 : i64, scratch_operands = 0 : i64, tpu.core_type = #tpu.core_type<tc>, window_params = [{transform_indices = @transform_0, window_bounds = array<i64: 1, 1, 16, 16>}, {transform_indices = @transform_1, window_bounds = array<i64: 1, 1, 16, 16>}]} {
    %c0 = arith.constant 0 : index
    %c0_0 = arith.constant 0 : index
    %c0_1 = arith.constant 0 : index
    %c0_2 = arith.constant 0 : index
    %0 = vector.load %arg2[%c0, %c0_0, %c0_1, %c0_2] : memref<1x1x16x16xf32, #tpu.memory_space<vmem>>, vector<1x1x16x16xf32>
    %c0_3 = arith.constant 0 : index
    %c0_4 = arith.constant 0 : index
    %c0_5 = arith.constant 0 : index
    %c0_6 = arith.constant 0 : index
    %1 = vector.load %arg3[%c0_3, %c0_4, %c0_5, %c0_6] : memref<1x1x16x16xf32, #tpu.memory_space<vmem>>, vector<1x1x16x16xf32>
    tpu.vector_store %arg3[%c0_3, %c0_4, %c0_5, %c0_6], %0 {strides = array<i32>} : memref<1x1x16x16xf32, #tpu.memory_space<vmem>>, vector<1x1x16x16xf32>,
    return
  }
  func.func @transform_0(%arg0: i32, %arg1: i32) -> (i32, i32, i32, i32) {
    %c1_i32 = arith.constant 1 : i32
    %0 = arith.addi %arg1, %c1_i32 : i32
    %c0_i32 = arith.constant 0 : i32
    %c0_i32_0 = arith.constant 0 : i32
    %c0_i32_1 = arith.constant 0 : i32
    return %arg0, %0, %c0_i32, %c0_i32_0 : i32, i32, i32, i32
  }
  func.func @transform_1(%arg0: i32, %arg1: i32) -> (i32, i32, i32, i32) {
    %c0_i32 = arith.constant 0 : i32
    %c0_i32_0 = arith.constant 0 : i32
    %c0_i32_1 = arith.constant 0 : i32
    return %arg0, %arg1, %c0_i32, %c0_i32_0 : i32, i32, i32, i32
  }
}

</mosaic_0001>

<bundles_post_ra>
// kernel: tpu_custom_call.1
= control target key start
LH: loop header
LB: loop body
LE: loop exit
PB: predicated region body
PF: predicated region fallthrough
CT: control target
= control target key end

     0   :  { %6 = vsyncpa [#allocation3], 0  ;;  %s786_s0 = inlined_call_operand.hbm [shape: f32[2,4,16,16], index: 0, kind: input, shape index: {}]   ;;  %s787_s1 = inlined_call_operand.hbm [shape: f32[2,2,16,16], index: 1, kind: output, shape index: {}]  }
   0x1   :  { %8 = vsyncpa [#allocation3 + $0x1], 0 }
   0x2   :  { %9 = vsyncpa [#allocation4], 0 }
   0x3   :  { %11 = vsyncpa [#allocation4 + $0x1], 0  ;;  %s563_s6 = smov 0   ;;  %s565_s7 = smov 0  }
   0x4   :  { %s567_s8 = smov 0   ;;  %s569_s9 = smov 0  }
   0x5   :  { %s571_s10 = smov 0   ;;  %s573_s11 = smov 0  }
   0x6   :  { %s575_s12 = smov 0   ;;  %s577_s13 = smov 0  }
   0x7   :  { %s579_s14 = smov 0   ;;  %s581_s15 = smov 0  }
   0x8   :  { %s583_s16 = smov 0  }
   0x9 LB: > { %s269_s17 = sadd.s32 4294967295, %s545_s16   ;;  %s270_s18 = sadd.s32 4294967294, %s545_s16   ;;  %s545_s16 = sphi %s583_s16, %s17_s16   ;;  %s541_s15 = sphi %s581_s15, %s811_s15   ;;  %s537_s14 = sphi %s579_s14, %s810_s14   ;;  %s533_s13 = sphi %s577_s13, %s809_s13   ;;  %s529_s12 = sphi %s575_s12, %s808_s12   ;;  %s525_s11 = sphi %s573_s11, %s807_s11   ;;  %s521_s10 = sphi %s571_s10, %s806_s10   ;;  %s517_s9 = sphi %s569_s9, %s805_s9   ;;  %s513_s8 = sphi %s567_s8, %s804_s8   ;;  %s509_s7 = sphi %s565_s7, %s803_s7   ;;  %s505_s6 = sphi %s563_s6, %s802_s6  }
   0xa   : > { %s26_s19 = sadd.s32 1, %s537_s14  ;;  %s29_s20 = sadd.s32 1, %s541_s15 }
   0xb   : > { %p27_p0 = scmp.ge.s32.totalorder %s26_s19, 2  ;;  %s40_s21 = sadd.s32 1, %s525_s11 }
   0xc   : > { %p47_p1 = scmp.ne.s32.totalorder %s525_s11, %s521_s10  ;;  %p48_p2 = scmp.eq.s32.totalorder %s545_s16, 0 }
   0xd   : > { %s624_s22 = scalar_select %p27_p0, 0, %s26_s19  }
   0xe   : > { %s813_s20 = smov (!%p27_p0, %s29_s20), %s541_s15  ;;  %p628_p3 = por %p48_p2, %p47_p1 }
   0xf   : > { %791 = sst [smem:[#allocation8_spill]] %s624_s22  ;;  %s34_s23 = sadd.s32 1, %s624_s22 }
  0x10   : > { %p31_p4 = scmp.ge.s32.totalorder %s813_s20, 2  ;;  %s36_s25 = ssub.s32 %s26_s19, %s34_s23 }
  0x11   : > { %p53_p5 = scmp.ne.s32.totalorder %s521_s10, %s517_s9  ;;  %p54_p6 = scmp.eq.s32.totalorder %s269_s17, 0 }
  0x12   : > { %s815_s20 = smov (%p31_p4, %s813_s20), 0  ;;  %s64_s27 = ssub.s32 %s537_s14, %s624_s22 }
  0x13   : > { %793 = sst [smem:[#allocation9_spill]] %s815_s20  ;;  %p635_p7 = por %p54_p6, %p53_p5 }
  0x14   : > { %s35_s28 = ssub.s32 %s541_s15, %s815_s20  ;;  %s68_s29 = sadd.s32 1, %s513_s8 }
  0x15   : > { %s37_s30 = sor.u32 %s36_s25, %s35_s28  ;;  %s65_s2 = sor.u32 %s64_s27, %s35_s28 }
  0x16   : > { %p38_p8 = scmp.eq.s32.totalorder %s37_s30, 0  ;;  %p66_p9 = scmp.eq.s32.totalorder %s65_s2, 0 }
  0x17   : > { %p78_p10 = scmp.ne.s32.totalorder %s513_s8, %s509_s7  ;;  %p79_p11 = scmp.eq.s32.totalorder %s269_s17, 3 }
  0x18   : > { %s647_s3 = scalar_select %p38_p8, %s525_s11, %s40_s21  }
  0x19   : > { %s650_s4 = scalar_select %p66_p9, %s513_s8, %s68_s29  }
  0x1a   : > { %p652_p12 = por %p79_p11, %p78_p10  ;;  %p84_p13 = scmp.ne.s32.totalorder %s509_s7, %s505_s6 }
  0x1b   : > { %p85_p0 = scmp.eq.s32.totalorder %s270_s18, 3  ;;  %p298_p1 = scmp.lt.s32.totalorder %s545_s16, 4 }
  0x1c   : > { %s795_s5 = scalar_select %p652_p12, 1, 0 }
  0x1d   : > { %s105_s9 = sand.u32 1, %s525_s11   ;;  %p662_p2 = por %p85_p0, %p84_p13 }
  0x1e   : > { %s273_s23 = sshll.u32 %s105_s9, 4  ;;  %s274_s17 = sshll.u32 %s537_s14, 1 }
  0x1f   : > { %s796_s19 = scalar_select %p662_p2, 1, 0 }
  0x20   : > { %s275_s21 = sshll.u32 %s541_s15, 3  ;;  %s109_s27 = scalar_lea.vmem [#allocation2], %s273_s23 }
  0x21   : > { %s210_s25 = sadd.s32 %s275_s21, %s274_s17  ;;  %s119_s28 = sshll.u32 %s109_s27, 4  ;;  %s668_s28 = int_to_ptr.vmem [resolvable:$true] %s119_s28 }
  0x22   : > { %s276_s29 = sshll.u32 %s210_s25, 7  ;;  %p675_p4 = pnand %p298_p1, %p628_p3 }
  0x23   : > { %s212_s20 = scalar_lea.hbm %s786_s0, %s276_s29  ;;  %s681_s23 = scalar_lea.sflag [#allocation3], %s105_s9 }
  0x24   : > { %s679_s22 = scalar_lea.hbm %s212_s20, 256  ;;  %s422_s17 = scalar_lea.hbm %s212_s20, 512 }
  0x25   : > { %p393_p5 = scmp.ne.s32.totalorder %s679_s22, %s422_s17  ;;  %p394_p6 = pneg %p675_p4 }
  0x26   : > { %s397_s25 = scalar_lea.hbm %s786_s0, 2048  ;;  %p398_p9 = scmp.lt.u32.totalorder %s679_s22, %s786_s0 }
  0x27   : > { %p395_p8 = pnand %p394_p6, %p393_p5  ;;  %p399_p10 = scmp.lt.u32.totalorder %s397_s25, %s422_s17 }
  0x28   : > { %p401_p13 = scmp.lt.u32.totalorder %s422_s17, %s679_s22 }
  0x29   : > { %p396_p3 = pneg %p395_p8  ;;  %p400_p11 = por %p399_p10, %p398_p9 }
  0x2b   : > { %p402_p0 = por %p401_p13, %p400_p11 }
  0x2d   : > { %p403_p1 = pnand %p402_p0, %p396_p3 }
  0x2f   : > { %406 = shalt.err (!%p403_p1)
}
  0x30   : > { %s407_s20 = scalar_lea.vmem %s668_s28, 256  ;;  %s547_s9 = smov [#allocation2]  }
  0x31   : > { %p408_p5 = scmp.ne.s32.totalorder %s668_s28, %s407_s20  ;;  %s412_s30 = sshll.u32 %s547_s9, 4  ;;  %s413_s30 = int_to_ptr.vmem [resolvable:$false] %s412_s30 }
  0x32   : > { %s414_s2 = scalar_lea.vmem %s413_s30, 512  ;;  %p415_p12 = scmp.lt.s32.totalorder %s668_s28, %s413_s30 }
  0x33   : > { %p410_p8 = pnand %p408_p5, %p394_p6  ;;  %p416_p9 = scmp.lt.s32.totalorder %s414_s2, %s407_s20 }
  0x35   : > { %p411_p2 = pneg %p410_p8  ;;  %p417_p10 = por %p416_p9, %p415_p12 }
  0x37   : > { %p418_p11 = pnand %p417_p10, %p411_p2 }
  0x39   : > { %421 = shalt.err (!%p418_p11)
}
  0x3a   : > { %s548_s17 = smov 128   ;;  %s549_s24 = smov 8  }
  0x3b   : > { %293 = dma.hbm_to_vmem [thread:$0]  (!%p675_p4), %s679_s22, 256, %s668_s28, %s681_s23, %s548_s17, %s548_s17, %s549_s24  }
  0x3c   : > { %p277_p6 = scmp.ge.s32.totalorder %s545_s16, 1  ;;  %p127_p3 = scmp.lt.s32.totalorder %s545_s16, 5 }
  0x3e   : > { %p128_p13 = pnand %p277_p6, %p127_p3 }
  0x3f   : > { %s133_s21 = sand.u32 (!%p128_p13), 1, %s521_s10  }
  0x40   : > { %131 = sbr.rel (%p128_p13) target bundleno = 101 (0x65), region = 24  ;;  %s278_s25 = sshll.u32 (!%p128_p13), %s133_s21, 4 }
  0x41   : > { %s134_s27 = scalar_lea.sflag (!%p128_p13), [#allocation3], %s133_s21  ;;  %s137_s29 = scalar_lea.vmem (!%p128_p13), [#allocation2], %s278_s25 }
  0x47   : > { %496 = dma.done.wait (%p635_p7), %s134_s27, 256  }
  0x48   : > { %498 = vsyncadd (%p635_p7), %s134_s27, 4294967040  ;;  %s153_s18 = sand.u32 1, %s509_s7   ;;  %s281_s22 = sshll.u32 %s529_s12, 1  ;;  %vm159_vm0 = vcmask 130048   ;;  %v157_v0 = vld [vmem:[%s137_s29] sm:$0xff]  ;;  %v158_v1 = vld [vmem:[%s137_s29 + $0x8] sm:$0xff] }
  0x49   : > { %s279_s28 = sshll.u32 %s153_s18, 4  ;;  %s282_s23 = sshll.u32 %s533_s13, 2 }
  0x4a   : > { %s155_s20 = scalar_lea.vmem [#allocation5], %s279_s28  ;;  %s175_s30 = sadd.s32 %s282_s23, %s281_s22 }
  0x4b   : > { %s178_s9 = sshll.u32 %s155_s20, 4  ;;  %s283_s2 = sshll.u32 %s175_s30, 7  ;;  %160 = vst.msk [vmem:[%s155_s20] sm:$0xff] %vm159_vm0, %v157_v0  ;;  %161 = vst.msk [vmem:[%s155_s20 + $0x8] sm:$0xff] %vm159_vm0, %v158_v1  ;;  %s718_s9 = int_to_ptr.vmem [resolvable:$true] %s178_s9 }
  0x4c   : > { %s723_s26 = scalar_lea.hbm %s787_s1, %s283_s2  ;;  %s725_s12 = scalar_lea.sflag [#allocation4], %s153_s18 }
  0x4d   : > { %s423_s13 = scalar_lea.vmem %s718_s9, 256  ;;  %p798_p12 = scmp.ne.s32.totalorder %s795_s5, 0 }
  0x4e   : > { %p424_p7 = scmp.ne.s32.totalorder %s718_s9, %s423_s13  ;;  %s550_s21 = smov [#allocation5]  }
  0x4f   : > { %s427_s25 = sshll.u32 %s550_s21, 4  ;;  %s428_s25 = int_to_ptr.vmem [resolvable:$false] %s427_s25 }
  0x50   : > { %p425_p2 = pnand %p424_p7, %p798_p12  ;;  %s429_s27 = scalar_lea.vmem %s428_s25, 512 }
  0x51   : > { %p430_p0 = scmp.lt.s32.totalorder %s718_s9, %s428_s25  ;;  %p431_p1 = scmp.lt.s32.totalorder %s429_s27, %s423_s13 }
  0x52   : > { %p426_p4 = pneg %p425_p2 }
  0x53   : > { %p432_p5 = por %p431_p1, %p430_p0 }
  0x55   : > { %p433_p8 = pnand %p432_p5, %p426_p4 }
  0x57   : > { %436 = shalt.err (!%p433_p8)
}
  0x58   : > { %s437_s29 = scalar_lea.hbm %s723_s26, 256  ;;  %s441_s28 = scalar_lea.hbm %s787_s1, 1024 }
  0x59   : > { %p438_p9 = scmp.ne.s32.totalorder %s723_s26, %s437_s29  ;;  %p442_p6 = scmp.lt.u32.totalorder %s723_s26, %s787_s1 }
  0x5a   : > { %p443_p3 = scmp.lt.u32.totalorder %s441_s28, %s437_s29  ;;  %p445_p7 = scmp.lt.u32.totalorder %s437_s29, %s723_s26 }
  0x5b   : > { %p439_p10 = pnand %p438_p9, %p798_p12 }
  0x5c   : > { %p444_p13 = por %p443_p3, %p442_p6 }
  0x5d   : > { %p440_p11 = pneg %p439_p10 }
  0x5e   : > { %p446_p2 = por %p445_p7, %p444_p13 }
  0x60   : > { %p447_p4 = pnand %p446_p2, %p440_p11 }
  0x62   : > { %450 = shalt.err (!%p447_p4)
}
  0x63   : > { %s551_s30 = smov 128   ;;  %s552_s2 = smov 8  }
  0x64   : > { %288 = dma.vmem_to_hbm [thread:$0]  (%p798_p12), %s718_s9, 256, %s723_s26, %s725_s12, %s551_s30, %s551_s30, %s552_s2  }
  0x65 PF: > { %p299_p0 = scmp.ge.s32.totalorder %s545_s16, 2  ;;  %s193_s17 = sand.u32 1, %s505_s6  }
  0x66   : > { %p799_p1 = scmp.ne.s32.totalorder %s796_s19, 0  ;;  %s194_s24 = scalar_lea.sflag [#allocation4], %s193_s17 }
  0x68   : > { %p295_p5 = pnand %p299_p0, %p799_p1 }
  0x6a   : > { %500 = dma.done.wait (!%p295_p5), %s194_s24, 256  }
  0x6b   : > { %502 = vsyncadd (!%p295_p5), %s194_s24, 4294967040  ;;  %s17_s16 = sadd.s32 1, %s545_s16   ;;  %s800_s5 = sld [smem:[#allocation8_spill]] }
  0x6c   : > { %p14_p8 = scmp.ge.s32.totalorder %s17_s16, 6   ;;  %s801_s26 = sld [smem:[#allocation9_spill]] }
  0x6d   : > { %s802_s6 = smov %s509_s7  ;;  %s803_s7 = smov %s513_s8 }
  0x6e   : > { %s804_s8 = smov %s650_s4  ;;  %s805_s9 = smov %s521_s10 }
  0x6f   : > { %s806_s10 = smov %s525_s11  ;;  %s807_s11 = smov %s647_s3 }
  0x70   : > { %s808_s12 = smov %s537_s14  ;;  %s809_s13 = smov %s541_s15 }
  0x71   : > { %s810_s14 = smov %s800_s5  ;;  %16 = sbr.rel (!%p14_p8) target bundleno = 9 (0x9), region = 69 }
  0x72   : > { %s811_s15 = smov %s801_s26 }
  0x78   :  { %199 = vsyncpa [#allocation3], 1 }
  0x79   :  { %201 = vsyncpa [#allocation3 + $0x1], 1 }
  0x7a   :  { %202 = vsyncpa [#allocation4], 1 }
  0x7b   :  { %204 = vsyncpa [#allocation4 + $0x1], 1 }

</bundles_post_ra>
